<compile_context>
chip_gen: v7x
topology: tpu7x:2x2x1
jax: 0.10.0
libtpu: 0.0.40
codegen_flags: <defaults>
</compile_context>

<pallas_src>
import jax
import jax.numpy as jnp
from jax.experimental import pallas as pl
from jax.experimental.pallas import tpu as pltpu


def _round_up(x: int, m: int) -> int:
    return ((x + m - 1) // m) * m


def _embed_kernel(x_ref, w_ref, b_ref, o_ref):
    # x_ref: (1, W, tn, F)   input block, native (B, W, N, F) layout
    # w_ref: (W, F, Ep)      full weight, resident across the grid
    # b_ref: (1, Ep)         bias (zero-padded to lane-dense Ep)
    # o_ref: (1, tn, Ep)     output block (lane-dense last dim)
    W = x_ref.shape[1]
    tn = x_ref.shape[2]
    Ep = o_ref.shape[2]

    acc = jnp.zeros((tn, Ep), dtype=jnp.float32)
    # Contract over the (W, F) window inside the kernel: W small matmuls of
    # (tn, F) @ (F, Ep), accumulated in f32 on the MXU.  This folds the
    # (B, W, N, F) -> (B*N, W*F) "transpose" into the BlockSpec / kernel and
    # avoids an extra HBM read+write pass over x.
    for w in range(W):
        acc = acc + jnp.dot(
            x_ref[0, w], w_ref[w], preferred_element_type=jnp.float32
        )
    # f32 bias add, then single downcast to the output dtype.
    o_ref[0] = (acc + b_ref[...]).astype(o_ref.dtype)


def sequential_embedding_forward(x, weight, bias, *, tn=256):
    """x:      (B, window_size, N, n_features)
       weight: (window_size * n_features, embedding_size)
       bias:   (embedding_size,)
       returns (B, N, embedding_size)
    """
    B, W, N, F = x.shape
    K, E = weight.shape
    assert K == W * F, "weight rows must equal window_size * n_features"

    # Lane-dense output: pad the embedding dim to a multiple of 128 so stores
    # are full-width vst (no masked partial stores) and more MXU columns fill.
    Ep = _round_up(E, 128)

    # Row tile over the stock axis: multiple of 8 sublanes, default 256 for the
    # MXU, clamped so small N does not force huge zero padding.
    tn = max(8, min(tn, _round_up(N, 8)))
    tn = _round_up(tn, 8)
    Np = _round_up(N, tn)

    # Weight viewed as (W, F, E) so the kernel can contract over (W, F) without
    # any host-side transpose of x; zero-pad E -> Ep (sliced off at the end).
    w3 = weight.reshape(W, F, E)
    if Ep != E:
        w3 = jnp.pad(w3, ((0, 0), (0, 0), (0, Ep - E)))
        bias_p = jnp.pad(bias, (0, Ep - E))
    else:
        bias_p = bias
    b2 = bias_p.reshape(1, Ep)

    # Pad the stock axis up to a whole number of tiles (padded rows produce
    # bias-only junk that is sliced away below).
    xp = x if Np == N else jnp.pad(x, ((0, 0), (0, 0), (0, Np - N), (0, 0)))

    grid = (B, Np // tn)
    out = pl.pallas_call(
        _embed_kernel,
        out_shape=jax.ShapeDtypeStruct((B, Np, Ep), x.dtype),
        grid_spec=pltpu.PrefetchScalarGridSpec(
            num_scalar_prefetch=0,
            grid=grid,
            in_specs=[
                # x block in native layout: (1, W, tn, F)
                pl.BlockSpec((1, W, tn, F), lambda b, n: (b, 0, n, 0)),
                # full weight, resident across all grid steps
                pl.BlockSpec((W, F, Ep), lambda b, n: (0, 0, 0)),
                # bias, resident
                pl.BlockSpec((1, Ep), lambda b, n: (0, 0)),
            ],
            out_specs=pl.BlockSpec((1, tn, Ep), lambda b, n: (b, n, 0)),
        ),
        compiler_params=pltpu.CompilerParams(
            dimension_semantics=("parallel", "parallel"),
        ),
    )(xp, w3, b2)

    # Drop E padding and N padding outside the kernel.
    return out[:, :N, :E]


if __name__ == "__main__":
    # Shapes consistent with the module: input_shape = (window_size, N, n_features)
    batch = 2
    window_size, N, n_features = 8, 4, 16
    embedding_size = 32
    K = window_size * n_features

    key = jax.random.PRNGKey(0)
    kx, kw, kb = jax.random.split(key, 3)

    x = jax.random.normal(kx, (batch, window_size, N, n_features), dtype=jnp.float32)
    # Deterministic parameter init (synthetic; no checkpoint load).
    weight = jax.random.normal(kw, (K, embedding_size), dtype=jnp.float32) * (1.0 / K ** 0.5)
    bias = jax.random.normal(kb, (embedding_size,), dtype=jnp.float32) * 0.01

    out = sequential_embedding_forward(x, weight, bias)
    out = jax.block_until_ready(out)

    # Reference in plain JAX (flatten-over-time linear embedding).
    ref = jnp.transpose(x, (0, 2, 1, 3)).reshape(batch * N, K) @ weight + bias
    ref = ref.reshape(batch, N, embedding_size)

    assert out.shape == (batch, N, embedding_size)
    assert jnp.allclose(out, ref, atol=1e-5, rtol=1e-5)

    print("KERNEL_OK")
</pallas_src>

<mosaic_0001>
module attributes {stable_mosaic.version = 11 : i64} {
  func.func @_embed_kernel(%arg0: i32, %arg1: i32, %arg2: memref<1x8x8x16xf32, #tpu.memory_space<vmem>>, %arg3: memref<8x16x128xf32, #tpu.memory_space<vmem>>, %arg4: memref<1x128xf32, #tpu.memory_space<vmem>>, %arg5: memref<1x8x128xf32, #tpu.memory_space<vmem>>) attributes {dimension_semantics = [#tpu.dimension_semantics<parallel>, #tpu.dimension_semantics<parallel>], iteration_bounds = array<i64: 2, 1>, scalar_prefetch = 0 : i64, scratch_operands = 0 : i64, tpu.core_type = #tpu.core_type<tc>, window_params = [{transform_indices = @transform_0, window_bounds = array<i64: 1, 8, 8, 16>}, {pipeline_mode = #tpu.pipeline_mode<synchronous>, transform_indices = @transform_1, window_bounds = array<i64: 8, 16, 128>}, {pipeline_mode = #tpu.pipeline_mode<synchronous>, transform_indices = @transform_2, window_bounds = array<i64: 1, 128>}, {transform_indices = @transform_3, window_bounds = array<i64: 1, 8, 128>}]} {
    %cst = arith.constant 0.000000e+00 : f32
    %0 = vector.broadcast %cst : f32 to vector<8x128xf32>
    %c0 = arith.constant 0 : index
    %c0_0 = arith.constant 0 : index
    %c0_1 = arith.constant 0 : index
    %c0_2 = arith.constant 0 : index
    %1 = vector.load %arg2[%c0, %c0_0, %c0_1, %c0_2] : memref<1x8x8x16xf32, #tpu.memory_space<vmem>>, vector<1x1x8x16xf32>
    %2 = vector.shape_cast %1 : vector<1x1x8x16xf32> to vector<8x16xf32>
    %c0_3 = arith.constant 0 : index
    %c0_4 = arith.constant 0 : index
    %c0_5 = arith.constant 0 : index
    %3 = vector.load %arg3[%c0_3, %c0_4, %c0_5] : memref<8x16x128xf32, #tpu.memory_space<vmem>>, vector<1x16x128xf32>
    %4 = vector.shape_cast %3 : vector<1x16x128xf32> to vector<16x128xf32>
    %cst_6 = arith.constant dense<0.000000e+00> : vector<8x128xf32>
    %5 = tpu.matmul %2, %4, %cst_6 {dimension_numbers = #tpu.dot_dimension_numbers<[1], [0], [0], [1], [0, 0, 1, 1], [], []>} : vector<8x16xf32>, vector<16x128xf32>, vector<8x128xf32> -> vector<8x128xf32>
    %6 = arith.addf %0, %5 : vector<8x128xf32>
    %c0_7 = arith.constant 0 : index
    %c1 = arith.constant 1 : index
    %c0_8 = arith.constant 0 : index
    %c0_9 = arith.constant 0 : index
    %7 = vector.load %arg2[%c0_7, %c1, %c0_8, %c0_9] : memref<1x8x8x16xf32, #tpu.memory_space<vmem>>, vector<1x1x8x16xf32>
    %8 = vector.shape_cast %7 : vector<1x1x8x16xf32> to vector<8x16xf32>
    %c1_10 = arith.constant 1 : index
    %c0_11 = arith.constant 0 : index
    %c0_12 = arith.constant 0 : index
    %9 = vector.load %arg3[%c1_10, %c0_11, %c0_12] : memref<8x16x128xf32, #tpu.memory_space<vmem>>, vector<1x16x128xf32>
    %10 = vector.shape_cast %9 : vector<1x16x128xf32> to vector<16x128xf32>
    %cst_13 = arith.constant dense<0.000000e+00> : vector<8x128xf32>
    %11 = tpu.matmul %8, %10, %cst_13 {dimension_numbers = #tpu.dot_dimension_numbers<[1], [0], [0], [1], [0, 0, 1, 1], [], []>} : vector<8x16xf32>, vector<16x128xf32>, vector<8x128xf32> -> vector<8x128xf32>
    %12 = arith.addf %6, %11 : vector<8x128xf32>
    %c0_14 = arith.constant 0 : index
    %c2 = arith.constant 2 : index
    %c0_15 = arith.constant 0 : index
    %c0_16 = arith.constant 0 : index
    %13 = vector.load %arg2[%c0_14, %c2, %c0_15, %c0_16] : memref<1x8x8x16xf32, #tpu.memory_space<vmem>>, vector<1x1x8x16xf32>
    %14 = vector.shape_cast %13 : vector<1x1x8x16xf32> to vector<8x16xf32>
    %c2_17 = arith.constant 2 : index
    %c0_18 = arith.constant 0 : index
    %c0_19 = arith.constant 0 : index
    %15 = vector.load %arg3[%c2_17, %c0_18, %c0_19] : memref<8x16x128xf32, #tpu.memory_space<vmem>>, vector<1x16x128xf32>
    %16 = vector.shape_cast %15 : vector<1x16x128xf32> to vector<16x128xf32>
    %cst_20 = arith.constant dense<0.000000e+00> : vector<8x128xf32>
    %17 = tpu.matmul %14, %16, %cst_20 {dimension_numbers = #tpu.dot_dimension_numbers<[1], [0], [0], [1], [0, 0, 1, 1], [], []>} : vector<8x16xf32>, vector<16x128xf32>, vector<8x128xf32> -> vector<8x128xf32>
    %18 = arith.addf %12, %17 : vector<8x128xf32>
    %c0_21 = arith.constant 0 : index
    %c3 = arith.constant 3 : index
    %c0_22 = arith.constant 0 : index
    %c0_23 = arith.constant 0 : index
    %19 = vector.load %arg2[%c0_21, %c3, %c0_22, %c0_23] : memref<1x8x8x16xf32, #tpu.memory_space<vmem>>, vector<1x1x8x16xf32>
    %20 = vector.shape_cast %19 : vector<1x1x8x16xf32> to vector<8x16xf32>
    %c3_24 = arith.constant 3 : index
    %c0_25 = arith.constant 0 : index
    %c0_26 = arith.constant 0 : index
    %21 = vector.load %arg3[%c3_24, %c0_25, %c0_26] : memref<8x16x128xf32, #tpu.memory_space<vmem>>, vector<1x16x128xf32>
    %22 = vector.shape_cast %21 : vector<1x16x128xf32> to vector<16x128xf32>
    %cst_27 = arith.constant dense<0.000000e+00> : vector<8x128xf32>
    %23 = tpu.matmul %20, %22, %cst_27 {dimension_numbers = #tpu.dot_dimension_numbers<[1], [0], [0], [1], [0, 0, 1, 1], [], []>} : vector<8x16xf32>, vector<16x128xf32>, vector<8x128xf32> -> vector<8x128xf32>
    %24 = arith.addf %18, %23 : vector<8x128xf32>
    %c0_28 = arith.constant 0 : index
    %c4 = arith.constant 4 : index
    %c0_29 = arith.constant 0 : index
    %c0_30 = arith.constant 0 : index
    %25 = vector.load %arg2[%c0_28, %c4, %c0_29, %c0_30] : memref<1x8x8x16xf32, #tpu.memory_space<vmem>>, vector<1x1x8x16xf32>
    %26 = vector.shape_cast %25 : vector<1x1x8x16xf32> to vector<8x16xf32>
    %c4_31 = arith.constant 4 : index
    %c0_32 = arith.constant 0 : index
    %c0_33 = arith.constant 0 : index
    %27 = vector.load %arg3[%c4_31, %c0_32, %c0_33] : memref<8x16x128xf32, #tpu.memory_space<vmem>>, vector<1x16x128xf32>
    %28 = vector.shape_cast %27 : vector<1x16x128xf32> to vector<16x128xf32>
    %cst_34 = arith.constant dense<0.000000e+00> : vector<8x128xf32>
    %29 = tpu.matmul %26, %28, %cst_34 {dimension_numbers = #tpu.dot_dimension_numbers<[1], [0], [0], [1], [0, 0, 1, 1], [], []>} : vector<8x16xf32>, vector<16x128xf32>, vector<8x128xf32> -> vector<8x128xf32>
    %30 = arith.addf %24, %29 : vector<8x128xf32>
    %c0_35 = arith.constant 0 : index
    %c5 = arith.constant 5 : index
    %c0_36 = arith.constant 0 : index
    %c0_37 = arith.constant 0 : index
    %31 = vector.load %arg2[%c0_35, %c5, %c0_36, %c0_37] : memref<1x8x8x16xf32, #tpu.memory_space<vmem>>, vector<1x1x8x16xf32>
    %32 = vector.shape_cast %31 : vector<1x1x8x16xf32> to vector<8x16xf32>
    %c5_38 = arith.constant 5 : index
    %c0_39 = arith.constant 0 : index
    %c0_40 = arith.constant 0 : index
    %33 = vector.load %arg3[%c5_38, %c0_39, %c0_40] : memref<8x16x128xf32, #tpu.memory_space<vmem>>, vector<1x16x128xf32>
    %34 = vector.shape_cast %33 : vector<1x16x128xf32> to vector<16x128xf32>
    %cst_41 = arith.constant dense<0.000000e+00> : vector<8x128xf32>
    %35 = tpu.matmul %32, %34, %cst_41 {dimension_numbers = #tpu.dot_dimension_numbers<[1], [0], [0], [1], [0, 0, 1, 1], [], []>} : vector<8x16xf32>, vector<16x128xf32>, vector<8x128xf32> -> vector<8x128xf32>
    %36 = arith.addf %30, %35 : vector<8x128xf32>
    %c0_42 = arith.constant 0 : index
    %c6 = arith.constant 6 : index
    %c0_43 = arith.constant 0 : index
    %c0_44 = arith.constant 0 : index
    %37 = vector.load %arg2[%c0_42, %c6, %c0_43, %c0_44] : memref<1x8x8x16xf32, #tpu.memory_space<vmem>>, vector<1x1x8x16xf32>
    %38 = vector.shape_cast %37 : vector<1x1x8x16xf32> to vector<8x16xf32>
    %c6_45 = arith.constant 6 : index
    %c0_46 = arith.constant 0 : index
    %c0_47 = arith.constant 0 : index
    %39 = vector.load %arg3[%c6_45, %c0_46, %c0_47] : memref<8x16x128xf32, #tpu.memory_space<vmem>>, vector<1x16x128xf32>
    %40 = vector.shape_cast %39 : vector<1x16x128xf32> to vector<16x128xf32>
    %cst_48 = arith.constant dense<0.000000e+00> : vector<8x128xf32>
    %41 = tpu.matmul %38, %40, %cst_48 {dimension_numbers = #tpu.dot_dimension_numbers<[1], [0], [0], [1], [0, 0, 1, 1], [], []>} : vector<8x16xf32>, vector<16x128xf32>, vector<8x128xf32> -> vector<8x128xf32>
    %42 = arith.addf %36, %41 : vector<8x128xf32>
    %c0_49 = arith.constant 0 : index
    %c7 = arith.constant 7 : index
    %c0_50 = arith.constant 0 : index
    %c0_51 = arith.constant 0 : index
    %43 = vector.load %arg2[%c0_49, %c7, %c0_50, %c0_51] : memref<1x8x8x16xf32, #tpu.memory_space<vmem>>, vector<1x1x8x16xf32>
    %44 = vector.shape_cast %43 : vector<1x1x8x16xf32> to vector<8x16xf32>
    %c7_52 = arith.constant 7 : index
    %c0_53 = arith.constant 0 : index
    %c0_54 = arith.constant 0 : index
    %45 = vector.load %arg3[%c7_52, %c0_53, %c0_54] : memref<8x16x128xf32, #tpu.memory_space<vmem>>, vector<1x16x128xf32>
    %46 = vector.shape_cast %45 : vector<1x16x128xf32> to vector<16x128xf32>
    %cst_55 = arith.constant dense<0.000000e+00> : vector<8x128xf32>
    %47 = tpu.matmul %44, %46, %cst_55 {dimension_numbers = #tpu.dot_dimension_numbers<[1], [0], [0], [1], [0, 0, 1, 1], [], []>} : vector<8x16xf32>, vector<16x128xf32>, vector<8x128xf32> -> vector<8x128xf32>
    %48 = arith.addf %42, %47 : vector<8x128xf32>
    %c0_56 = arith.constant 0 : index
    %c0_57 = arith.constant 0 : index
    %49 = vector.load %arg4[%c0_56, %c0_57] : memref<1x128xf32, #tpu.memory_space<vmem>>, vector<1x128xf32>
    %50 = vector.broadcast %49 : vector<1x128xf32> to vector<8x128xf32>
    %51 = arith.addf %48, %50 : vector<8x128xf32>
    %c0_58 = arith.constant 0 : index
    %c0_59 = arith.constant 0 : index
    %c0_60 = arith.constant 0 : index
    %52 = vector.load %arg5[%c0_58, %c0_59, %c0_60] : memref<1x8x128xf32, #tpu.memory_space<vmem>>, vector<1x8x128xf32>
    %53 = vector.shape_cast %52 : vector<1x8x128xf32> to vector<8x128xf32>
    %54 = vector.shape_cast %51 : vector<8x128xf32> to vector<1x8x128xf32>
    tpu.vector_store %arg5[%c0_58, %c0_59, %c0_60], %54 {strides = array<i32>} : memref<1x8x128xf32, #tpu.memory_space<vmem>>, vector<1x8x128xf32>,
    return
  }
  func.func @transform_0(%arg0: i32, %arg1: i32) -> (i32, i32, i32, i32) {
    %c0_i32 = arith.constant 0 : i32
    %c0_i32_0 = arith.constant 0 : i32
    %c0_i32_1 = arith.constant 0 : i32
    return %arg0, %c0_i32, %arg1, %c0_i32_0 : i32, i32, i32, i32
  }
  func.func @transform_1(%arg0: i32, %arg1: i32) -> (i32, i32, i32) {
    %c0_i32 = arith.constant 0 : i32
    %c0_i32_0 = arith.constant 0 : i32
    %c0_i32_1 = arith.constant 0 : i32
    %c0_i32_2 = arith.constant 0 : i32
    return %c0_i32, %c0_i32_0, %c0_i32_1 : i32, i32, i32
  }
  func.func @transform_2(%arg0: i32, %arg1: i32) -> (i32, i32) {
    %c0_i32 = arith.constant 0 : i32
    %c0_i32_0 = arith.constant 0 : i32
    %c0_i32_1 = arith.constant 0 : i32
    return %c0_i32, %c0_i32_0 : i32, i32
  }
  func.func @transform_3(%arg0: i32, %arg1: i32) -> (i32, i32, i32) {
    %c0_i32 = arith.constant 0 : i32
    %c0_i32_0 = arith.constant 0 : i32
    return %arg0, %arg1, %c0_i32 : i32, i32, i32
  }
}

</mosaic_0001>

<bundles_post_ra>
// kernel: tpu_custom_call.1
= control target key start
LH: loop header
LB: loop body
LE: loop exit
PB: predicated region body
PF: predicated region fallthrough
CT: control target
= control target key end

     0   :  { %8 = vsyncpa [#allocation3], 0  ;;  %s1607_s0 = inlined_call_operand.hbm [shape: f32[2,8,8,16], index: 0, kind: input, shape index: {}]   ;;  %s1608_s1 = inlined_call_operand.hbm [shape: f32[8,16,128], index: 1, kind: input, shape index: {}]   ;;  %s1609_s2 = inlined_call_operand.vmem [shape: f32[1,128], index: 2, kind: input, shape index: {}]   ;;  %s1610_s3 = inlined_call_operand.hbm [shape: f32[2,8,128], index: 3, kind: output, shape index: {}]  }
   0x1   :  { %10 = vsyncpa [#allocation3 + $0x1], 0 }
   0x2   :  { %11 = vsyncpa [#allocation6], 0 }
   0x3   :  { %12 = vsyncpa [#allocation4], 0 }
   0x4   :  { %14 = vsyncpa [#allocation4 + $0x1], 0  ;;  %s1354_s12 = smov 0   ;;  %s1356_s13 = smov 0  }
   0x5   :  { %s1358_s14 = smov 0   ;;  %s1360_s15 = smov 0  }
   0x6   :  { %s1362_s16 = smov 0   ;;  %s1364_s17 = smov 0  }
   0x7 LB: > { %s965_s18 = sadd.s32 4294967295, %s1324_s17   ;;  %s966_s19 = sadd.s32 4294967294, %s1324_s17   ;;  %s1324_s17 = sphi %s1364_s17, %s20_s17   ;;  %s1320_s16 = sphi %s1362_s16, %s1634_s16   ;;  %s1316_s15 = sphi %s1360_s15, %s1633_s15   ;;  %s1312_s14 = sphi %s1358_s14, %s1632_s14   ;;  %s1308_s13 = sphi %s1356_s13, %s1631_s13   ;;  %s1304_s12 = sphi %s1354_s12, %s1630_s12  }
   0x8   : > { %p54_p0 = scmp.ne.s32.totalorder %s1308_s13, %s1304_s12  ;;  %p1388_p1 = scmp.eq.s32.totalorder %s965_s18, 0 }
   0x9   : > { %p1392_p2 = scmp.eq.s32.totalorder %s965_s18, 1  ;;  %p128_p3 = scmp.eq.s32.totalorder %s966_s19, 1 }
   0xa   : > { %s1615_s20 = scalar_select %p1388_p1, 1, 0 }
   0xb   : > { %s1616_s21 = scalar_select %p1392_p2, 1, 0 }
   0xc   : > { %p1398_p4 = por %p1388_p1, %p54_p0  ;;  %p967_p5 = scmp.ge.s32.totalorder %s1324_s17, 1 }
   0xd   : > { %p1403_p6 = por %p128_p3, %p54_p0  ;;  %p135_p7 = scmp.lt.s32.totalorder %s1324_s17, 3 }
   0xe   : > { %s1617_s22 = scalar_select %p1398_p4, 1, 0 }
   0xf   : > { %s1618_s23 = scalar_select %p1403_p6, 1, 0 }
  0x10   : > { %p1408_p8 = pnand %p967_p5, %p135_p7  ;;  %s1326_s25 = smov [#allocation5]  }
  0x11   : > { %s147_s26 = sshll.u32 %s1326_s25, 4  ;;  %s32_s28 = sadd.s32 1, %s1320_s16  ;;  %s148_s26 = int_to_ptr.vmem [resolvable:$true] %s147_s26 }
  0x12   : > { %s1619_s24 = scalar_select %p1408_p8, 1, 0 }
  0x13   : > { %p1110_p9 = pneg %p1408_p8  ;;  %s1180_s4 = scalar_lea.hbm %s1608_s1, 2048 }
  0x14   : > { %p1181_p12 = scmp.ne.s32.totalorder %s1608_s1, %s1180_s4  ;;  %p1187_p5 = scmp.lt.u32.totalorder %s1180_s4, %s1608_s1 }
  0x15   : > { %p1417_p11 = pnand %p1110_p9, %p1388_p1 }
  0x17   : > { %p1182_p13 = pneg %p1417_p11 }
  0x19   : > { %p1183_p0 = pnand %p1182_p13, %p1181_p12 }
  0x1b   : > { %p1184_p3 = pneg %p1183_p0 }
  0x1d   : > { %p1189_p7 = pnand %p1187_p5, %p1184_p3 }
  0x1f   : > { %1192 = shalt.err (!%p1189_p7)
}
  0x20   : > { %s1193_s9 = scalar_lea.vmem %s148_s26, 2048  ;;  %p1201_p1 = scmp.lt.s32.totalorder %s148_s26, %s148_s26 }
  0x21   : > { %p1194_p9 = scmp.ne.s32.totalorder %s148_s26, %s1193_s9  ;;  %p1202_p4 = scmp.lt.s32.totalorder %s1193_s9, %s1193_s9 }
  0x23   : > { %p1196_p10 = pnand %p1194_p9, %p1182_p13  ;;  %p1203_p8 = por %p1202_p4, %p1201_p1 }
  0x25   : > { %p1197_p6 = pneg %p1196_p10 }
  0x27   : > { %p1204_p2 = pnand %p1203_p8, %p1197_p6 }
  0x29   : > { %1207 = shalt.err (!%p1204_p2)
}
  0x2a   : > { %s1327_s10 = smov 128   ;;  %s1328_s11 = smov 8  }
  0x2b   : > { %1113 = dma.hbm_to_vmem [thread:$0]  (!%p1417_p11), %s1608_s1, 2048, %s148_s26, [#allocation6], %s1327_s10, %s1327_s10, %s1328_s11  }
  0x2c   : > { %p34_p1 = scmp.ge.s32.totalorder %s32_s28, 2  ;;  %s41_s25 = sadd.s32 1, %s1312_s14 }
  0x2d   : > { %p48_p2 = scmp.ne.s32.totalorder %s1312_s14, %s1308_s13  ;;  %p49_p4 = scmp.eq.s32.totalorder %s1324_s17, 0 }
  0x2e   : > { %s1636_s28 = smov (%p34_p1, %s32_s28), 0  ;;  %p1622_p8 = scmp.ne.s32.totalorder %s1616_s21, 0 }
  0x2f   : > { %p1447_p6 = por %p49_p4, %p48_p2  ;;  %s36_s30 = ssub.s32 %s1320_s16, %s1636_s28 }
  0x30   : > { %p1453_p10 = por %p1622_p8, %p48_p2  ;;  %p1123_p12 = scmp.lt.s32.totalorder %s1324_s17, 2 }
  0x31   : > { %p39_p11 = scmp.eq.s32.totalorder %s36_s30, 0  ;;  %s164_s26 = sand.u32 1, %s1312_s14  }
  0x32   : > { %s970_s4 = sshll.u32 %s164_s26, 6  ;;  %s997_s6 = sshll.u32 %s1320_s16, 10 }
  0x33   : > { %s1462_s5 = scalar_select %p39_p11, %s1312_s14, %s41_s25  }
  0x34   : > { %s1468_s9 = scalar_lea.hbm %s1607_s0, %s997_s6  ;;  %s168_s21 = scalar_lea.vmem [#allocation2], %s970_s4 }
  0x35   : > { %s176_s18 = sshll.u32 %s168_s21, 4  ;;  %p1474_p13 = pnand %p1123_p12, %p1447_p6  ;;  %s1470_s18 = int_to_ptr.vmem [resolvable:$true] %s176_s18 }
  0x36   : > { %s1478_s25 = scalar_lea.sflag [#allocation3], %s164_s26  ;;  %s1208_s30 = scalar_lea.hbm %s1468_s9, 1024 }
  0x37   : > { %p1209_p0 = scmp.ne.s32.totalorder %s1468_s9, %s1208_s30  ;;  %p1210_p3 = pneg %p1474_p13 }
  0x38   : > { %s1213_s29 = scalar_lea.hbm %s1607_s0, 2048  ;;  %p1214_p9 = scmp.lt.u32.totalorder %s1468_s9, %s1607_s0 }
  0x39   : > { %p1211_p5 = pnand %p1210_p3, %p1209_p0  ;;  %p1215_p1 = scmp.lt.u32.totalorder %s1213_s29, %s1208_s30 }
  0x3a   : > { %p1217_p4 = scmp.lt.u32.totalorder %s1208_s30, %s1468_s9 }
  0x3b   : > { %p1212_p7 = pneg %p1211_p5  ;;  %p1216_p2 = por %p1215_p1, %p1214_p9 }
  0x3d   : > { %p1218_p6 = por %p1217_p4, %p1216_p2 }
  0x3f   : > { %p1219_p8 = pnand %p1218_p6, %p1212_p7 }
  0x41   : > { %1222 = shalt.err (!%p1219_p8)
}
  0x42   : > { %s1223_s26 = scalar_lea.vmem %s1470_s18, 1024  ;;  %s1329_s21 = smov [#allocation2]  }
  0x43   : > { %p1224_p12 = scmp.ne.s32.totalorder %s1470_s18, %s1223_s26  ;;  %s1228_s4 = sshll.u32 %s1329_s21, 4  ;;  %s1229_s4 = int_to_ptr.vmem [resolvable:$false] %s1228_s4 }
  0x44   : > { %s1230_s6 = scalar_lea.vmem %s1229_s4, 2048  ;;  %p1231_p5 = scmp.lt.s32.totalorder %s1470_s18, %s1229_s4 }
  0x45   : > { %p1226_p11 = pnand %p1224_p12, %p1210_p3  ;;  %p1232_p9 = scmp.lt.s32.totalorder %s1230_s6, %s1223_s26 }
  0x47   : > { %p1227_p0 = pneg %p1226_p11  ;;  %p1233_p1 = por %p1232_p9, %p1231_p5 }
  0x49   : > { %p1234_p2 = pnand %p1233_p1, %p1227_p0 }
  0x4b   : > { %1237 = shalt.err (!%p1234_p2)
}
  0x4c   : > { %1117 = dma.hbm_to_vmem [thread:$0]  (!%p1474_p13), %s1468_s9, 1024, %s1470_s18, %s1478_s25, %s1327_s10, %s1327_s10, %s1328_s11  }
  0x4d   : > { %p1625_p3 = scmp.ne.s32.totalorder %s1619_s24, 0 }
  0x4e   : > { %s1512_s30 = sand.u32 (!%p1625_p3), 1, %s1308_s13   ;;  %p1626_p7 = scmp.ne.s32.totalorder (!%p1625_p3), %s1617_s22, 0 }
  0x4f   : > { %188 = sbr.rel (%p1625_p3) target bundleno = 341 (0x155), region = 32  ;;  %s974_s29 = sshll.u32 (!%p1625_p3), %s1512_s30, 6 }
  0x50   : > { %s191_s7 = scalar_lea.sflag (!%p1625_p3), [#allocation3], %s1512_s30  ;;  %s1516_s8 = scalar_lea.vmem (!%p1625_p3), [#allocation2], %s974_s29 }
  0x56   : > { %1291 = dma.done.wait (%p1626_p7), %s191_s7, 1024  }
  0x57   : > { %1293 = vsyncadd (%p1626_p7), %s191_s7, 4294966272  ;;  %p1627_p13 = scmp.ne.s32.totalorder %s1615_s20, 0 }
  0x59   : > { %1295 = dma.done.wait (%p1627_p13), [#allocation6], 2048  }
  0x5a   : > { %1297 = vsyncadd (%p1627_p13), [#allocation6], 4294965248  ;;  %v1330_v0 = vmov 0.0|0.0   ;;  %vm1331_vm0 = vmmov 0   ;;  %v1332_v1 = vmov 0.0   ;;  %v227_v2 = vld [vmem:[#allocation5 + $0x10] sm:$0xff] }
  0x5b   : > { %1078 = vmatprep.subr.bf16.mxu0 %v1330_v0  ;;  %1081 = vmatprep.subr.bf16.mxu1 %v1330_v0  ;;  %v228_v3 = vld [vmem:[#allocation5 + $0x18] sm:$0xff]  ;;  %v222_v4 = vld [vmem:[#allocation5] sm:$0xff]  ;;  %v223_v6 = vld [vmem:[#allocation5 + $0x8] sm:$0xff]  ;;  %vm229_vm1 = vcmask 130048   ;;  %s976_s20 = sshll.u32 %s1512_s30, 3  ;;  %s994_s10 = sshll.u32 %s1316_s15, 7 }
  0x5c   : > { %1026 = vmatprep.mubr.msk.f32.mxu0 %vm1331_vm0, %v1332_v1  ;;  %1033 = vmatprep.mubr.msk.f32.mxu1 %vm1331_vm0, %v1332_v1  ;;  %v1079_v5 = vpack.c.bf16 %v228_v3, %v227_v2  ;;  %v1082_v7 = vpack.c.bf16 %v223_v6, %v222_v4  ;;  %v379_v8 = vld [vmem:[#allocation5 + $0x20] sm:$0xff]  ;;  %v380_v9 = vld [vmem:[#allocation5 + $0x28] sm:$0xff]  ;;  %v458_v10 = vld [vmem:[#allocation5 + $0x30] sm:$0xff]  ;;  %s220_s11 = scalar_lea.vmem [#allocation7], %s976_s20  ;;  %s1558_s25 = scalar_lea.hbm %s1610_s3, %s994_s10 }
  0x5d   : > { %v977_v11 = vld [vmem:[%s1516_s8 + $0x8] sm:$0xff]  ;;  %v1085_v12 = vpack.c.bf16 %v380_v9, %v379_v8  ;;  %v459_v13 = vld [vmem:[#allocation5 + $0x38] sm:$0xff]  ;;  %v221_v14 = vld [vmem:[%s1516_s8] sm:$0xff]  ;;  %s874_s9 = sshll.u32 %s220_s11, 4  ;;  %s860_s26 = scalar_lea.sflag [#allocation4], %s1512_s30  ;;  %s1560_s9 = int_to_ptr.vmem [resolvable:$true] %s874_s9 }
  0x5e   : > { %1080 = vmatpush3.bf16.msra.mxu0 %v1079_v5  ;;  %1083 = vmatpush3.bf16.msra.mxu1 %v1082_v7  ;;  %v1088_v15 = vpack.c.bf16 %v459_v13, %v458_v10  ;;  %v537_v16 = vld [vmem:[#allocation5 + $0x40] sm:$0xff]  ;;  %v538_v17 = vld [vmem:[#allocation5 + $0x48] sm:$0xff]  ;;  %v616_v18 = vld [vmem:[#allocation5 + $0x50] sm:$0xff]  ;;  %s1238_s21 = scalar_lea.vmem %s1560_s9, 128  ;;  %s1333_s15 = smov [#allocation7]  }
  0x5f   : > { %1084 = vmatprep.subr.bf16.mxu0 %v1330_v0  ;;  %1087 = vmatprep.subr.bf16.mxu1 %v1330_v0  ;;  %v617_v19 = vld [vmem:[#allocation5 + $0x58] sm:$0xff]  ;;  %v980_v20 = vld [vmem:[%s1516_s8 + $0x10] sm:$0xff]  ;;  %v1091_v21 = vpack.c.bf16 %v538_v17, %v537_v16  ;;  %v695_v24 = vld [vmem:[#allocation5 + $0x60] sm:$0xff]  ;;  %p1239_p4 = scmp.ne.s32.totalorder %s1560_s9, %s1238_s21  ;;  %s1242_s4 = sshll.u32 %s1333_s15, 4  ;;  %s1243_s4 = int_to_ptr.vmem [resolvable:$false] %s1242_s4 }
  0x60   : > { %v982_v22 = vld [vmem:[%s1516_s8 + $0x18] sm:$0xff]  ;;  %v1094_v23 = vpack.c.bf16 %v617_v19, %v616_v18  ;;  %v696_v25 = vld [vmem:[#allocation5 + $0x68] sm:$0xff]  ;;  %v774_v26 = vld [vmem:[#allocation5 + $0x70] sm:$0xff]  ;;  %s1244_s6 = scalar_lea.vmem %s1243_s4, 256  ;;  %p1245_p12 = scmp.lt.s32.totalorder %s1560_s9, %s1243_s4 }
  0x61   : > { %1027 = vmatmul.mubr.msk.f32.vlgmr.msra.gmra.mrb[0].mxu0 %vm229_vm1, %v977_v11  ;;  %1034 = vmatmul.mubr.msk.f32.vlgmr.msra.gmra.mrb[0].mxu1 %vm229_vm1, %v221_v14  ;;  %v775_v27 = vld [vmem:[#allocation5 + $0x78] sm:$0xff]  ;;  %v984_v28 = vld [vmem:[%s1516_s8 + $0x20] sm:$0xff]  ;;  %v1097_v29 = vpack.c.bf16 %v696_v25, %v695_v24  ;;  %v986_v30 = vld [vmem:[%s1516_s8 + $0x28] sm:$0xff]  ;;  %p1240_p6 = pnand %p1239_p4, %p1453_p10  ;;  %p1246_p11 = scmp.lt.s32.totalorder %s1244_s6, %s1238_s21 }
  0x62   : > { %1086 = vmatpush3.bf16.msra.mxu0 %v1085_v12  ;;  %1040 = vmatprep.mubr.msk.f32.mxu0 %vm1331_vm0, %v1332_v1  ;;  %v1100_v31 = vpack.c.bf16 %v775_v27, %v774_v26  ;;  %v988_v32 = vld [vmem:[%s1516_s8 + $0x30] sm:$0xff]  ;;  %v990_v33 = vld [vmem:[%s1516_s8 + $0x38] sm:$0xff]  ;;  %v992_v55 = vld [vmem:[%s1609_s2] ss:$0 sm:$0xff] }
  0x63   : > { %1089 = vmatpush3.bf16.msra.mxu1 %v1088_v15  ;;  %1090 = vmatprep.subr.bf16.mxu0 %v1330_v0  ;;  %p1241_p8 = pneg %p1240_p6  ;;  %p1247_p0 = por %p1246_p11, %p1245_p12 }
  0x64   : > { %1047 = vmatprep.mubr.msk.f32.mxu1 %vm1331_vm0, %v1332_v1  ;;  %1093 = vmatprep.subr.bf16.mxu1 %v1330_v0 }
  0x65   : > { %1041 = vmatmul.mubr.msk.f32.vlgmr.msra.gmra.mrb[2].mxu0 %vm229_vm1, %v980_v20  ;;  %p1248_p5 = pnand %p1247_p0, %p1241_p8 }
  0x66   : > { %1092 = vmatpush3.bf16.msra.mxu0 %v1091_v21  ;;  %1048 = vmatmul.mubr.msk.f32.vlgmr.msra.gmra.mrb[2].mxu1 %vm229_vm1, %v982_v22 }
  0x67   : > { %1054 = vmatprep.mubr.msk.f32.mxu0 %vm1331_vm0, %v1332_v1  ;;  %1095 = vmatpush3.bf16.msra.mxu1 %v1094_v23 }
  0x68   : > { %1096 = vmatprep.subr.bf16.mxu0 %v1330_v0  ;;  %1061 = vmatprep.mubr.msk.f32.mxu1 %vm1331_vm0, %v1332_v1 }
  0x69   : > { %1055 = vmatmul.mubr.msk.f32.vlgmr.msra.gmra.mrb[4].mxu0 %vm229_vm1, %v984_v28  ;;  %1099 = vmatprep.subr.bf16.mxu1 %v1330_v0 }
  0x6a   : > { %1098 = vmatpush3.bf16.msra.mxu0 %v1097_v29  ;;  %1062 = vmatmul.mubr.msk.f32.vlgmr.msra.gmra.mrb[4].mxu1 %vm229_vm1, %v986_v30 }
  0x6b   : > { %1068 = vmatprep.mubr.msk.f32.mxu0 %vm1331_vm0, %v1332_v1  ;;  %1101 = vmatpush3.bf16.msra.mxu1 %v1100_v31 }
  0x6c   : > { %1075 = vmatprep.mubr.msk.f32.mxu1 %vm1331_vm0, %v1332_v1 }
  0x6d   : > { %1069 = vmatmul.mubr.msk.f32.vlgmr.msra.gmra.mrb[6].mxu0 %vm229_vm1, %v988_v32 }
  0x6e   : > { %1076 = vmatmul.mubr.msk.f32.vlgmr.msra.gmra.mrb[6].mxu1 %vm229_vm1, %v990_v33 }
 0x134   : > { %v299_v34 = vpop.f32.mrb[0].mxu0  ;;  %v372_v36 = vpop.f32.mrb[0].mxu1 }
 0x135   : > { %v1028_v35 = vpop.f32.mrb[1].mxu0  ;;  %v373_v37 = vadd.f32 %v372_v36, %v299_v34  ;;  %v1035_v38 = vpop.f32.mrb[1].mxu1 }
 0x138   : > { %v450_v39 = vpop.f32.mrb[2].mxu0 }
 0x139   : > { %v454_v40 = vadd.f32 %v450_v39, %v373_v37  ;;  %v1042_v41 = vpop.f32.mrb[3].mxu0  ;;  %v529_v42 = vpop.f32.mrb[2].mxu1 }
 0x13a   : > { %v1049_v43 = vpop.f32.mrb[3].mxu1 }
 0x13b   : > { %v533_v44 = vadd.f32 %v529_v42, %v454_v40 }
 0x13c   : > { %v608_v45 = vpop.f32.mrb[4].mxu0 }
 0x13d   : > { %v612_v46 = vadd.f32 %v608_v45, %v533_v44  ;;  %v1056_v47 = vpop.f32.mrb[5].mxu0  ;;  %v687_v48 = vpop.f32.mrb[4].mxu1 }
 0x13e   : > { %v1063_v49 = vpop.f32.mrb[5].mxu1 }
 0x13f   : > { %v691_v50 = vadd.f32 %v687_v48, %v612_v46 }
 0x140   : > { %v766_v51 = vpop.f32.mrb[6].mxu0 }
 0x141   : > { %v770_v52 = vadd.f32 %v766_v51, %v691_v50  ;;  %v1070_v53 = vpop.f32.mrb[7].mxu0  ;;  %v845_v54 = vpop.f32.mrb[6].mxu1 }
 0x142   : > { %v1077_v56 = vpop.f32.mrb[7].mxu1 }
 0x143   : > { %v849_v57 = vadd.f32 %v845_v54, %v770_v52 }
 0x145   : > { %v857_v58 = vadd.f32 %v992_v55, %v849_v57 }
 0x147   : > { %858 = vst [vmem:[%s220_s11] sm:$0xff] %v857_v58 }
 0x148   : > { %1251 = shalt.err (!%p1248_p5)
}
 0x149   : > { %s1252_s30 = scalar_lea.hbm %s1558_s25, 128  ;;  %s1256_s8 = scalar_lea.hbm %s1610_s3, 256 }
 0x14a   : > { %p1253_p9 = scmp.ne.s32.totalorder %s1558_s25, %s1252_s30  ;;  %p1257_p3 = scmp.lt.u32.totalorder %s1558_s25, %s1610_s3 }
 0x14b   : > { %p1258_p7 = scmp.lt.u32.totalorder %s1256_s8, %s1252_s30  ;;  %p1260_p4 = scmp.lt.u32.totalorder %s1252_s30, %s1558_s25 }
 0x14c   : > { %p1254_p1 = pnand %p1253_p9, %p1453_p10 }
 0x14d   : > { %p1259_p13 = por %p1258_p7, %p1257_p3 }
 0x14e   : > { %p1255_p2 = pneg %p1254_p1 }
 0x14f   : > { %p1261_p6 = por %p1260_p4, %p1259_p13 }
 0x151   : > { %p1262_p8 = pnand %p1261_p6, %p1255_p2 }
 0x153   : > { %1265 = shalt.err (!%p1262_p8)
}
 0x154   : > { %1108 = dma.vmem_to_hbm [thread:$0]  (%p1453_p10), %s1560_s9, 128, %s1558_s25, %s860_s26  }
 0x155 PF: > { %s886_s24 = sand.u32 1, %s1304_s12   ;;  %p1628_p12 = scmp.ne.s32.totalorder %s1618_s23, 0 }
 0x156   : > { %p1629_p11 = scmp.ge.s32.totalorder %s1324_s17, 2  ;;  %s887_s10 = scalar_lea.sflag [#allocation4], %s886_s24 }
 0x158   : > { %p1119_p0 = pnand %p1629_p11, %p1628_p12 }
 0x15a   : > { %1299 = dma.done.wait (!%p1119_p0), %s887_s10, 128  }
 0x15b   : > { %1301 = vsyncadd (!%p1119_p0), %s887_s10, 4294967168  ;;  %s20_s17 = sadd.s32 1, %s1324_s17   ;;  %s1630_s12 = smov %s1308_s13 }
 0x15c   : > { %p17_p5 = scmp.ge.s32.totalorder %s20_s17, 4   ;;  %s1631_s13 = smov %s1312_s14 }
 0x15d   : > { %s1632_s14 = smov %s1462_s5  ;;  %s1633_s15 = smov %s1320_s16 }
 0x15e   : > { %s1634_s16 = smov %s1636_s28  ;;  %19 = sbr.rel (!%p17_p5) target bundleno = 7 (0x7), region = 95 }
 0x165   :  { %892 = vsyncpa [#allocation3], 1 }
 0x166   :  { %894 = vsyncpa [#allocation3 + $0x1], 1 }
 0x167   :  { %895 = vsyncpa [#allocation6], 1 }
 0x168   :  { %896 = vsyncpa [#allocation4], 1 }
 0x169   :  { %898 = vsyncpa [#allocation4 + $0x1], 1 }

</bundles_post_ra>
